<compile_context>
chip_gen: v6e
topology: v6e:2x2x1
jax: 0.10.0
libtpu: 0.0.40
codegen_flags: <defaults>
</compile_context>

<pallas_src>
import math

import jax
import jax.numpy as jnp
from jax.experimental import pallas as pl
from jax.experimental.pallas import tpu as pltpu


def _senet_kernel(x_ref, w1_ref, w2_ref, o_ref):
    # x_ref : (TB, C)  caller dtype (f32 or bf16)  batch tile of activations
    # w1_ref: (C, R)   bf16  squeeze weight (transposed), VMEM-resident
    # w2_ref: (R, C)   bf16  excitation weight (transposed), VMEM-resident
    # squeeze -> relu -> excitation -> sigmoid; MXU matmuls in bf16, f32 acc.
    g = jnp.dot(x_ref[...].astype(jnp.bfloat16), w1_ref[...],
                preferred_element_type=jnp.float32)          # (TB, R)
    g = jnp.maximum(g, 0.0)
    g = jnp.dot(g.astype(jnp.bfloat16), w2_ref[...],
                preferred_element_type=jnp.float32)          # (TB, C)
    g = jax.nn.sigmoid(g)                                    # f32 elementwise
    # Channel gating: re-read x from VMEM instead of keeping it live across
    # both matmuls (frees vregs; vld slots are idle in this DMA-bound kernel).
    o_ref[...] = (x_ref[...].astype(jnp.float32) * g).astype(o_ref.dtype)


def _round_up(n, m):
    return (n + m - 1) // m * m


def _pick_row_tile(B, block_rows):
    """Row tile: multiple of 8 sublanes, large enough to amortize grid-step
    overhead, but capped so a large B still yields >= ~8 grid steps (deep
    prefetch/writeback pipeline; both v7x TensorCores stay busy)."""
    if B <= 8:
        return B                              # full dim -> valid block shape
    depth_cap = _round_up(pl.cdiv(B, 8), 8)   # at least ~8 grid steps
    return max(8, min(block_rows, depth_cap))


def senet(x, w1_t, w2_t, *, block_rows=1024):
    """SENet forward.

    x    : (..., C) activations, f32 or bf16 (leading dims fold into batch).
    w1_t : (C, C // ratio)  squeeze weight, transposed  (PyTorch weight.T)
    w2_t : (C // ratio, C)  excitation weight, transposed
    Returns an array with the same shape and dtype as x.
    """
    C, R = w1_t.shape
    orig_shape = x.shape
    x2 = x.reshape(-1, C)                     # collapse of leading dims: free
    B = x2.shape[0]

    # One-time cast (no-op if caller already holds bf16 weights; make_senet
    # pre-casts so the per-call astype disappears entirely).
    w1_b = w1_t if w1_t.dtype == jnp.bfloat16 else w1_t.astype(jnp.bfloat16)
    w2_b = w2_t if w2_t.dtype == jnp.bfloat16 else w2_t.astype(jnp.bfloat16)

    TB = _pick_row_tile(B, block_rows)
    grid = (pl.cdiv(B, TB),)                  # ragged last tile is masked by Pallas

    itemsize = jnp.dtype(x2.dtype).itemsize
    cost = pl.CostEstimate(
        flops=4 * B * C * R,                  # two matmuls
        transcendentals=B * C,                # sigmoid
        bytes_accessed=B * C * 2 * itemsize + 2 * (C * R * 2),
    )

    # Double-buffered in+out tiles + resident bf16 weights (+1 MiB margin).
    vmem_need = 2 * TB * C * 2 * itemsize + 4 * C * R * 2 + (1 << 20)
    vmem_limit = None if vmem_need <= (16 << 20) else min(vmem_need, 64 << 20)

    out = pl.pallas_call(
        _senet_kernel,
        out_shape=jax.ShapeDtypeStruct((B, C), x2.dtype),
        grid=grid,
        in_specs=[
            pl.BlockSpec((TB, C), lambda i: (i, 0)),   # batch-tiled activations
            pl.BlockSpec((C, R), lambda i: (0, 0)),    # weights stay VMEM-resident
            pl.BlockSpec((R, C), lambda i: (0, 0)),
        ],
        out_specs=pl.BlockSpec((TB, C), lambda i: (i, 0)),
        compiler_params=pltpu.CompilerParams(
            dimension_semantics=("parallel",),         # shard rows across v7x TCs
            vmem_limit_bytes=vmem_limit,
        ),
        cost_estimate=cost,
    )(x2, w1_b, w2_b)

    return out.reshape(orig_shape)


def make_senet(w1_t, w2_t, *, block_rows=1024):
    """Cast SE weights to bf16 once at init and return a jitted forward fn."""
    w1_b = jnp.asarray(w1_t, dtype=jnp.bfloat16)
    w2_b = jnp.asarray(w2_t, dtype=jnp.bfloat16)

    @jax.jit
    def fwd(x):
        return senet(x, w1_b, w2_b, block_rows=block_rows)

    return fwd


def _uniform(key, shape, fan_in):
    # PyTorch nn.Linear default init: U(-1/sqrt(fan_in), 1/sqrt(fan_in))
    bound = 1.0 / math.sqrt(float(fan_in))
    return jax.random.uniform(key, shape, jnp.float32, minval=-bound, maxval=bound)


if __name__ == "__main__":
    # Small demo shapes: fused embedding (batch, seq, hidden), ratio = 8.
    BATCH, SEQ, C = 2, 8, 32
    RATIO = 8
    R = C // RATIO

    key = jax.random.PRNGKey(0)
    kx, k1, k2 = jax.random.split(key, 3)

    x = jax.random.normal(kx, (BATCH, SEQ, C), jnp.float32)
    w1_t = _uniform(k1, (C, R), C)      # sequeeze.weight.T   (bias=False)
    w2_t = _uniform(k2, (R, C), R)      # excitation.weight.T (bias=False)

    fwd = make_senet(w1_t, w2_t)

    # --- f32 activations --------------------------------------------------
    out = jax.block_until_ready(fwd(x))
    assert out.shape == x.shape and out.dtype == x.dtype

    # Reference 1: identical arithmetic to the kernel (bf16 matmuls, f32 acc).
    w1_b = w1_t.astype(jnp.bfloat16)
    w2_b = w2_t.astype(jnp.bfloat16)
    x2 = x.reshape(-1, C)
    g = jnp.dot(x2.astype(jnp.bfloat16), w1_b, preferred_element_type=jnp.float32)
    g = jnp.maximum(g, 0.0)
    g = jnp.dot(g.astype(jnp.bfloat16), w2_b, preferred_element_type=jnp.float32)
    ref_bf16 = (x2 * jax.nn.sigmoid(g)).reshape(x.shape)
    assert jnp.allclose(out, ref_bf16, atol=1e-3, rtol=1e-3), \
        "mismatch vs bf16-matmul reference"

    # Reference 2: pure-f32 module semantics (loosened for bf16 MXU inputs).
    gates_f32 = jax.nn.sigmoid(jnp.maximum(x2 @ w1_t, 0.0) @ w2_t)
    ref_f32 = (x2 * gates_f32).reshape(x.shape)
    assert jnp.allclose(out, ref_f32, atol=5e-2, rtol=5e-2), \
        "drifted from f32 module semantics"

    # --- bf16 activations (halved HBM traffic path) -----------------------
    x_bf16 = x.astype(jnp.bfloat16)
    out_bf16 = jax.block_until_ready(fwd(x_bf16))
    assert out_bf16.dtype == jnp.bfloat16 and out_bf16.shape == x.shape
    assert jnp.allclose(out_bf16.astype(jnp.float32), ref_f32,
                        atol=1e-1, rtol=1e-1), "bf16 activation path drifted"

    print("KERNEL_OK")
</pallas_src>

<mosaic_0001>
module attributes {stable_mosaic.version = 11 : i64} {
  func.func @_senet_kernel(%arg0: i32, %arg1: memref<8x32xf32, #tpu.memory_space<vmem>>, %arg2: memref<32x4xbf16, #tpu.memory_space<vmem>>, %arg3: memref<4x32xbf16, #tpu.memory_space<vmem>>, %arg4: memref<8x32xf32, #tpu.memory_space<vmem>>) attributes {dimension_semantics = [#tpu.dimension_semantics<parallel>], iteration_bounds = array<i64: 2>, scalar_prefetch = 0 : i64, scratch_operands = 0 : i64, tpu.core_type = #tpu.core_type<tc>, window_params = [{transform_indices = @transform_0, window_bounds = array<i64: 8, 32>}, {pipeline_mode = #tpu.pipeline_mode<synchronous>, transform_indices = @transform_1, window_bounds = array<i64: 32, 4>}, {pipeline_mode = #tpu.pipeline_mode<synchronous>, transform_indices = @transform_2, window_bounds = array<i64: 4, 32>}, {transform_indices = @transform_3, window_bounds = array<i64: 8, 32>}]} {
    %c0 = arith.constant 0 : index
    %c0_0 = arith.constant 0 : index
    %0 = vector.load %arg1[%c0, %c0_0] : memref<8x32xf32, #tpu.memory_space<vmem>>, vector<8x32xf32>
    %1 = arith.truncf %0 : vector<8x32xf32> to vector<8x32xbf16>
    %c0_1 = arith.constant 0 : index
    %c0_2 = arith.constant 0 : index
    %2 = vector.load %arg2[%c0_1, %c0_2] : memref<32x4xbf16, #tpu.memory_space<vmem>>, vector<32x4xbf16>
    %cst = arith.constant dense<0.000000e+00> : vector<8x4xf32>
    %3 = tpu.matmul %1, %2, %cst {dimension_numbers = #tpu.dot_dimension_numbers<[1], [0], [0], [1], [0, 0, 1, 1], [], []>} : vector<8x32xbf16>, vector<32x4xbf16>, vector<8x4xf32> -> vector<8x4xf32>
    %cst_3 = arith.constant 0.000000e+00 : f32
    %4 = vector.broadcast %cst_3 : f32 to vector<8x4xf32>
    %5 = arith.maximumf %3, %4 : vector<8x4xf32>
    %6 = arith.truncf %5 : vector<8x4xf32> to vector<8x4xbf16>
    %c0_4 = arith.constant 0 : index
    %c0_5 = arith.constant 0 : index
    %7 = vector.load %arg3[%c0_4, %c0_5] : memref<4x32xbf16, #tpu.memory_space<vmem>>, vector<4x32xbf16>
    %cst_6 = arith.constant dense<0.000000e+00> : vector<8x32xf32>
    %8 = tpu.matmul %6, %7, %cst_6 {dimension_numbers = #tpu.dot_dimension_numbers<[1], [0], [0], [1], [0, 0, 1, 1], [], []>} : vector<8x4xbf16>, vector<4x32xbf16>, vector<8x32xf32> -> vector<8x32xf32>
    %9 = arith.negf %8 : vector<8x32xf32>
    %10 = math.exp %9 : vector<8x32xf32>
    %cst_7 = arith.constant 1.000000e+00 : f32
    %11 = vector.broadcast %cst_7 : f32 to vector<8x32xf32>
    %12 = arith.addf %11, %10 : vector<8x32xf32>
    %13 = arith.divf %11, %12 : vector<8x32xf32>
    %c0_8 = arith.constant 0 : index
    %c0_9 = arith.constant 0 : index
    %14 = vector.load %arg1[%c0_8, %c0_9] : memref<8x32xf32, #tpu.memory_space<vmem>>, vector<8x32xf32>
    %15 = arith.mulf %14, %13 : vector<8x32xf32>
    %c0_10 = arith.constant 0 : index
    %c0_11 = arith.constant 0 : index
    %16 = vector.load %arg4[%c0_10, %c0_11] : memref<8x32xf32, #tpu.memory_space<vmem>>, vector<8x32xf32>
    tpu.vector_store %arg4[%c0_10, %c0_11], %15 {strides = array<i32>} : memref<8x32xf32, #tpu.memory_space<vmem>>, vector<8x32xf32>,
    return
  }
  func.func @transform_0(%arg0: i32) -> (i32, i32) {
    %c0_i32 = arith.constant 0 : i32
    %c0_i32_0 = arith.constant 0 : i32
    return %arg0, %c0_i32 : i32, i32
  }
  func.func @transform_1(%arg0: i32) -> (i32, i32) {
    %c0_i32 = arith.constant 0 : i32
    %c0_i32_0 = arith.constant 0 : i32
    %c0_i32_1 = arith.constant 0 : i32
    return %c0_i32, %c0_i32_0 : i32, i32
  }
  func.func @transform_2(%arg0: i32) -> (i32, i32) {
    %c0_i32 = arith.constant 0 : i32
    %c0_i32_0 = arith.constant 0 : i32
    %c0_i32_1 = arith.constant 0 : i32
    return %c0_i32, %c0_i32_0 : i32, i32
  }
  func.func @transform_3(%arg0: i32) -> (i32, i32) {
    %c0_i32 = arith.constant 0 : i32
    %c0_i32_0 = arith.constant 0 : i32
    return %arg0, %c0_i32 : i32, i32
  }
}

</mosaic_0001>

<bundles_post_ra>
// kernel: fwd.1
= control target key start
LH: loop header
LB: loop body
LE: loop exit
PB: predicated region body
PF: predicated region fallthrough
CT: control target
= control target key end

     0   :  { %8 = vsyncpa [#allocation3], 0  ;;  %s836_s0 = inlined_call_operand.hbm [shape: f32[16,32], index: 0, kind: input, shape index: {}]   ;;  %s837_s1 = inlined_call_operand.hbm [shape: bf16[32,4], index: 1, kind: input, shape index: {}]   ;;  %s838_s2 = inlined_call_operand.vmem [shape: bf16[4,32], index: 2, kind: input, shape index: {}]   ;;  %s839_s3 = inlined_call_operand.hbm [shape: f32[16,32], index: 3, kind: output, shape index: {}]  }
   0x1   :  { %10 = vsyncpa [#allocation3 + $0x1], 0 }
   0x2   :  { %11 = vsyncpa [#allocation6], 0 }
   0x3   :  { %12 = vsyncpa [#allocation4], 0 }
   0x4   :  { %14 = vsyncpa [#allocation4 + $0x1], 0  ;;  %s673_s12 = smov 0   ;;  %s675_s13 = smov 0  }
   0x5   :  { %s677_s14 = smov 0   ;;  %s679_s15 = smov 0  }
   0x6 LB: > { %s694_s16 = sadd.s32 4294967295, %s644_s15   ;;  %s417_s17 = sadd.s32 4294967294, %s644_s15   ;;  %s644_s15 = sphi %s679_s15, %s861_s15   ;;  %s640_s14 = sphi %s677_s14, %s860_s14   ;;  %s636_s13 = sphi %s675_s13, %s859_s13   ;;  %s632_s12 = sphi %s673_s12, %s858_s12  }
   0x7   : > { %p40_p0 = scmp.ne.s32.totalorder %s636_s13, %s632_s12  ;;  %p840_p1 = scmp.eq.s32.totalorder %s694_s16, 0 }
   0x8   : > { %p112_p3 = scmp.eq.s32.totalorder %s417_s17, 1  ;;  %p418_p5 = scmp.ge.s32.totalorder %s644_s15, 1 }
   0x9   : > { %p703_p4 = por %p840_p1, %p40_p0  ;;  %p119_p7 = scmp.lt.s32.totalorder %s644_s15, 3 }
   0xa   : > { %p708_p6 = por %p112_p3, %p40_p0  ;;  %s646_s21 = smov [#allocation5]  }
   0xb   : > { %s844_s18 = scalar_select %p703_p4, 1, 0 }
   0xc   : > { %s845_s19 = scalar_select %p708_p6, 1, 0 }
   0xd   : > { %p713_p8 = pnand %p418_p5, %p119_p7  ;;  %s131_s22 = sshll.u32 %s646_s21, 4  ;;  %s132_s22 = int_to_ptr.vmem [resolvable:$true] %s131_s22 }
   0xe   : > { %s727_s24 = sadd.s32 1, %s644_s15   ;;  %s27_s25 = sadd.s32 1, %s640_s14 }
   0xf   : > { %s846_s20 = scalar_select %p713_p8, 1, 0 }
  0x10   : > { %p463_p9 = pneg %p713_p8  ;;  %s24_s26 = ssub.s32 %s644_s15, %s727_s24 }
  0x11   : > { %s533_s27 = scalar_lea.vmem %s132_s22, 256  ;;  %p541_p5 = scmp.lt.s32.totalorder %s132_s22, %s132_s22 }
  0x12   : > { %p722_p11 = pnand %p463_p9, %p840_p1  ;;  %p534_p13 = scmp.ne.s32.totalorder %s132_s22, %s533_s27 }
  0x13   : > { %p542_p7 = scmp.lt.s32.totalorder %s533_s27, %s533_s27 }
  0x14   : > { %p524_p12 = pneg %p722_p11 }
  0x15   : > { %p543_p10 = por %p542_p7, %p541_p5 }
  0x16   : > { %p536_p0 = pnand %p534_p13, %p524_p12 }
  0x18   : > { %p537_p3 = pneg %p536_p0 }
  0x1a   : > { %p544_p2 = pnand %p543_p10, %p537_p3 }
  0x1c   : > { %547 = shalt.err (!%p544_p2)
}
  0x1d   : > { %s647_s28 = smov 64   ;;  %s648_s29 = smov 4  }
  0x1e   : > { %466 = dma.hbm_to_vmem [thread:$0]  (!%p722_p11), %s837_s1, 256, %s132_s22, [#allocation6], %s647_s28, %s647_s28, %s648_s29  }
  0x1f   : > { %p25_p9 = scmp.eq.s32.totalorder %s24_s26, 0  ;;  %p34_p12 = scmp.ne.s32.totalorder %s640_s14, %s636_s13 }
  0x20   : > { %p35_p10 = scmp.eq.s32.totalorder %s644_s15, 0  ;;  %p476_p2 = scmp.lt.s32.totalorder %s644_s15, 2 }
  0x21   : > { %s744_s5 = scalar_select %p25_p9, %s640_s14, %s27_s25  }
  0x22   : > { %p36_p13 = por %p35_p10, %p34_p12  ;;  %p848_p0 = scmp.eq.s32.totalorder %s694_s16, 1 }
  0x23   : > { %s148_s7 = sand.u32 1, %s640_s14   ;;  %s422_s8 = sshll.u32 %s644_s15, 7 }
  0x24   : > { %p748_p3 = por %p848_p0, %p34_p12  ;;  %s421_s9 = sshll.u32 %s148_s7, 3 }
  0x25   : > { %s757_s17 = scalar_lea.hbm %s836_s0, %s422_s8  ;;  %s152_s21 = scalar_lea.vmem [#allocation2], %s421_s9 }
  0x26   : > { %s849_s6 = scalar_select %p748_p3, 1, 0 }
  0x27   : > { %s159_s22 = sshll.u32 %s152_s21, 4  ;;  %p759_p11 = pnand %p476_p2, %p36_p13  ;;  %s160_s22 = int_to_ptr.vmem [resolvable:$true] %s159_s22 }
  0x28   : > { %s149_s25 = scalar_lea.sflag [#allocation3], %s148_s7  ;;  %s548_s26 = scalar_lea.hbm %s757_s17, 128 }
  0x29   : > { %p549_p5 = scmp.ne.s32.totalorder %s757_s17, %s548_s26  ;;  %p550_p7 = pneg %p759_p11 }
  0x2a   : > { %s553_s29 = scalar_lea.hbm %s836_s0, 256  ;;  %p554_p10 = scmp.lt.s32.totalorder %s757_s17, %s836_s0 }
  0x2b   : > { %p551_p9 = pnand %p550_p7, %p549_p5  ;;  %p555_p2 = scmp.lt.s32.totalorder %s553_s29, %s548_s26 }
  0x2d   : > { %p552_p12 = pneg %p551_p9  ;;  %p556_p13 = por %p555_p2, %p554_p10 }
  0x2f   : > { %p557_p0 = pnand %p556_p13, %p552_p12 }
  0x31   : > { %560 = shalt.err (!%p557_p0)
}
  0x32   : > { %s561_s8 = scalar_lea.vmem %s160_s22, 128  ;;  %s649_s7 = smov [#allocation2]  }
  0x33   : > { %p562_p1 = scmp.ne.s32.totalorder %s160_s22, %s561_s8  ;;  %s566_s9 = sshll.u32 %s649_s7, 4  ;;  %s567_s9 = int_to_ptr.vmem [resolvable:$false] %s566_s9 }
  0x34   : > { %s568_s10 = scalar_lea.vmem %s567_s9, 256  ;;  %p569_p5 = scmp.lt.s32.totalorder %s160_s22, %s567_s9 }
  0x35   : > { %p564_p6 = pnand %p562_p1, %p550_p7  ;;  %p570_p9 = scmp.lt.s32.totalorder %s568_s10, %s561_s8 }
  0x37   : > { %p565_p3 = pneg %p564_p6  ;;  %p571_p4 = por %p570_p9, %p569_p5 }
  0x39   : > { %p572_p8 = pnand %p571_p4, %p565_p3 }
  0x3b   : > { %575 = shalt.err (!%p572_p8)
}
  0x3c   : > { %470 = dma.hbm_to_vmem [thread:$0]  (!%p759_p11), %s757_s17, 128, %s160_s22, %s149_s25  }
  0x3d   : > { %p851_p12 = scmp.ne.s32.totalorder %s846_s20, 0 }
  0x3e   : > { %s780_s11 = sand.u32 (!%p851_p12), 1, %s636_s13   ;;  %p852_p1 = scmp.ne.s32.totalorder (!%p851_p12), %s844_s18, 0 }
  0x3f   : > { %168 = sbr.rel (%p851_p12) target bundleno = 519 (0x207), region = 32  ;;  %s424_s21 = sshll.u32 (!%p851_p12), %s780_s11, 3 }
  0x40   : > { %s171_s26 = scalar_lea.sflag (!%p851_p12), [#allocation3], %s780_s11  ;;  %s174_s27 = scalar_lea.vmem (!%p851_p12), [#allocation2], %s424_s21 }
  0x44   : > { %619 = dma.done.wait (%p852_p1), %s171_s26, 128  }
  0x45   : > { %621 = vsyncadd (%p852_p1), %s171_s26, 4294967168  ;;  %p853_p4 = scmp.eq.s32.totalorder %s694_s16, 0 }
  0x47   : > { %623 = dma.done.wait (%p853_p4), [#allocation6], 256   ;;  %p854_p6 = pmov %p853_p4 }
  0x48   : > { %v650_v0 = vmov 0.0   ;;  %vm651_vm0 = vmmov 0   ;;  %v516_v1 = vld [vmem:[#allocation5 + $0x8] sm:$0xff]   ;;  %v517_v2 = vld [vmem:[#allocation5] sm:$0xff]   ;;  %v202_v3 = vld [vmem:[%s174_s27] sm:$0xff]  ;;  %vm220_vm1 = vcmask 261120  }
  0x49   : > { %625 = vsyncadd (%p854_p6), [#allocation6], 4294967040  ;;  %441 = vmatprep.subr.bf16.mxu0 %v650_v0  ;;  %445 = vmatprep.mubr.msk.bf16.mxu0 %vm651_vm0, %v650_v0  ;;  %v203_v4 = vpack.c.bf16 %v202_v3, %v202_v3  ;;  %v266_v5 = vld [vmem:[%s838_s2] sm:$0x3]  ;;  %vm271_vm2 = vcmask 1041408   ;;  %vm267_vm3 = vcmask 31744  }
  0x4a   : > { %449 = vmatprep.subr.bf16.mxu1 %v650_v0  ;;  %451 = vmatprep.mubr.msk.bf16.mxu1 %vm651_vm0, %v650_v0  ;;  %v273_v6 = vsel %vm271_vm2, %v266_v5, 0  ;;  %s433_s17 = sshll.u32 %s694_s16, 7  ;;  %s200_s22 = scalar_lea.vmem [#allocation7], %s424_s21 }
  0x4b   : > { %442 = vmatpush3.bf16.msra.mxu0 %v516_v1  ;;  %450 = vmatpush3.bf16.msra.mxu1 %v273_v6  ;;  %s337_s23 = sshll.u32 %s200_s22, 4  ;;  %s335_s29 = scalar_lea.hbm %s839_s3, %s433_s17  ;;  %s338_s23 = int_to_ptr.vmem [resolvable:$true] %s337_s23 }
  0x4c   : > { %443 = vmatprep.subr.bf16.mxu0 %v650_v0  ;;  %s324_s30 = scalar_lea.sflag [#allocation4], %s780_s11  ;;  %s576_s4 = scalar_lea.vmem %s338_s23, 128 }
  0x4d   : > { %p577_p8 = scmp.ne.s32.totalorder %s338_s23, %s576_s4  ;;  %p855_p3 = scmp.ne.s32.totalorder %s849_s6, 0 }
  0x4e   : > { %s652_s8 = smov [#allocation7]  }
  0x4f   : > { %444 = vmatpush3.bf16.msra.mxu0 %v517_v2  ;;  %p578_p11 = pnand %p577_p8, %p855_p3  ;;  %s580_s16 = sshll.u32 %s652_s8, 4  ;;  %s581_s16 = int_to_ptr.vmem [resolvable:$false] %s580_s16 }
  0x50   : > { %s582_s7 = scalar_lea.vmem %s581_s16, 256  ;;  %p583_p10 = scmp.lt.s32.totalorder %s338_s23, %s581_s16 }
  0x51   : > { %p579_p7 = pneg %p578_p11  ;;  %p584_p2 = scmp.lt.s32.totalorder %s582_s7, %s576_s4 }
  0x52   : > { %446 = vmatmul.mubr.msk.bf16.vlgmr.msra.gmra.mxu0 %vm220_vm1, %v203_v4 }
  0x53   : > { %p585_p13 = por %p584_p2, %p583_p10 }
  0x55   : > { %p586_p0 = pnand %p585_p13, %p579_p7 }
 0x112   : > { %v258_v7 = vpop.f32.mrf.mxu0 }
 0x113   : > { %v264_v8 = vmax.f32 %v258_v7, 0.0 }
 0x114   : > { %v447_v9 = vpop.f32.mrf.mxu0 }
 0x115   : > { %v265_v10 = vpack.c.bf16 %v264_v8, %v264_v8 }
 0x116   : > { %v261_v11 = vpop.f32.mrf.mxu0 }
 0x117   : > { %452 = vmatmul.mubr.msk.bf16.vlgmr.msra.gmra.mxu1 %vm267_vm3, %v265_v10 }
 0x118   : > { %v448_v12 = vpop.f32.mrf.mxu0 }
 0x1d7   : > { %v309_v13 = vpop.f32.mrf.mxu1 }
 0x1d8   : > { %v431_v14 = vmul.f32 -1.442695, %v309_v13 }
 0x1d9   : > { %v453_v15 = vpop.f32.mrf.mxu1 }
 0x1da   : > { %518 = vpow2.f32 %v431_v14 }
 0x1db   : > { %v312_v16 = vpop.f32.mrf.mxu1 }
 0x1dd   : > { %v454_v17 = vpop.f32.mrf.mxu1 }
 0x1e7   : > { %v519_v18 = vpop.eup %518 }
 0x1e8   : > { %v318_v19 = vadd.f32 1.0, %v519_v18 }
 0x1ea   : > { %520 = vrcp.f32 %v318_v19 }
 0x1f7   : > { %v521_v20 = vpop.eup %520 }
 0x1f8   : > { %v321_v21 = vmul.f32 %v521_v20, %v202_v3 }
 0x1fa   : > { %322 = vst.msk [vmem:[%s200_s22] sm:$0xff] %vm220_vm1, %v321_v21 }
 0x1fb   : > { %589 = shalt.err (!%p586_p0)
}
 0x1fc   : > { %s590_s9 = scalar_lea.hbm %s335_s29, 128  ;;  %s594_s21 = scalar_lea.hbm %s839_s3, 256 }
 0x1fd   : > { %p591_p5 = scmp.ne.s32.totalorder %s335_s29, %s590_s9  ;;  %p595_p1 = scmp.lt.s32.totalorder %s335_s29, %s839_s3 }
 0x1fe   : > { %p596_p4 = scmp.lt.s32.totalorder %s594_s21, %s590_s9 }
 0x1ff   : > { %p592_p9 = pnand %p591_p5, %p855_p3 }
 0x200   : > { %p597_p6 = por %p596_p4, %p595_p1 }
 0x201   : > { %p593_p12 = pneg %p592_p9 }
 0x203   : > { %p598_p8 = pnand %p597_p6, %p593_p12 }
 0x205   : > { %601 = shalt.err (!%p598_p8)
}
 0x206   : > { %461 = dma.vmem_to_hbm [thread:$0]  (%p855_p3), %s338_s23, 128, %s335_s29, %s324_s30  }
 0x207 PF: > { %s349_s18 = sand.u32 1, %s632_s12   ;;  %p856_p11 = scmp.ne.s32.totalorder %s845_s19, 0 }
 0x208   : > { %p857_p7 = scmp.ge.s32.totalorder %s644_s15, 2  ;;  %s350_s20 = scalar_lea.sflag [#allocation4], %s349_s18 }
 0x20a   : > { %p472_p10 = pnand %p857_p7, %p856_p11 }
 0x20c   : > { %p473_p2 = pneg %p472_p10 }
 0x20e   : > { %627 = dma.done.wait (%p473_p2), %s350_s20, 128  }
 0x20f   : > { %629 = vsyncadd (%p473_p2), %s350_s20, 4294967168  ;;  %p17_p13 = scmp.ge.s32.totalorder %s727_s24, 4   ;;  %s858_s12 = smov %s636_s13 }
 0x210   : > { %s859_s13 = smov %s640_s14  ;;  %s860_s14 = smov %s744_s5 }
 0x211   : > { %s861_s15 = smov %s727_s24  ;;  %19 = sbr.rel (!%p17_p13) target bundleno = 6 (0x6), region = 81 }
 0x216   :  { %355 = vsyncpa [#allocation3], 1 }
 0x217   :  { %357 = vsyncpa [#allocation3 + $0x1], 1 }
 0x218   :  { %358 = vsyncpa [#allocation6], 1 }
 0x219   :  { %359 = vsyncpa [#allocation4], 1 }
 0x21a   :  { %361 = vsyncpa [#allocation4 + $0x1], 1 }

</bundles_post_ra>
